<compile_context>
chip_gen: v5e
topology: v5e:2x2
jax: 0.10.0
libtpu: 0.0.40
codegen_flags: <defaults>
</compile_context>

<pallas_src>
import jax
import jax.numpy as jnp
from jax.experimental import pallas as pl
from jax.experimental.pallas import tpu as pltpu

# KarateClub: 34 nodes, 34 (one-hot) features, 4 classes.
N_NODES = 34
N_FEATURES = 34
HIDDEN = 3
N_CLASSES = 4
N_EDGES = 80  # synthetic deterministic edge set (KarateClub has ~78 undirected edges)

LANE = 128      # lane (last-dim) padding: vreg / MXU width
ROW_PAD = 40    # sublane padding for the Â@X block: next multiple of 8 above 34
W1_OFF = ROW_PAD                 # 40
W2_OFF = W1_OFF + LANE           # 168
SLAB_ROWS = W2_OFF + LANE        # 296 (multiple of 8)


def _gcn_kernel(slab_ref, h_ref, z_ref):
    # Static sub-views of the single coalesced input slab (zero-cost views).
    ax = slab_ref[0:ROW_PAD, :]                # [40, 128]  Â@X  (+ ones bias column)
    w1 = slab_ref[W1_OFF:W1_OFF + LANE, :]     # [128, 128] W1  (+ [b1, 1] bias row)
    w2 = slab_ref[W2_OFF:W2_OFF + LANE, :]     # [128, 128] W2  (+ b2 bias row)

    # h = relu(Â X W1 + b1)   -- bias folded into the matmul via the ones column.
    h = jnp.maximum(
        jnp.dot(ax, w1, preferred_element_type=jnp.float32), 0.0
    )  # [40, 128]; col 3 holds the carried "1" used to fold b2, cols 4.. are 0.

    # z = h W2 + b2           -- bias folded via the carried ones column of h.
    z = jnp.dot(h, w2, preferred_element_type=jnp.float32)  # [40, 128]

    # Emit the narrow results directly (block shape == full array dims -> legal);
    # no post-kernel slicing needed and padded rows never escape the kernel.
    h_ref[...] = h[:N_NODES, :HIDDEN]
    z_ref[...] = z[:N_NODES, :N_CLASSES]


def pad_params(a_hat, x, w1, b1, w2, b2):
    """One-time (init) precompute + packing of all operands into a single slab.

    Slab layout ([296, 128] f32):
      rows   0.. 39 : Â@X in [:34, :34], 1.0 in column 34 for the 34 valid rows
      rows  40..167 : W1 in [:34, :3], bias row 34 = [b1, 1.0] (the 1.0 makes
                      h column 3 a carried "ones" column for folding b2)
      rows 168..295 : W2 in [:3, :4], bias row 3 = b2
    """
    ax = a_hat.astype(jnp.float32) @ x.astype(jnp.float32)   # [34, 34]

    slab = jnp.zeros((SLAB_ROWS, LANE), jnp.float32)
    # --- Â@X block ---
    slab = slab.at[0:N_NODES, 0:N_FEATURES].set(ax)
    slab = slab.at[0:N_NODES, N_FEATURES].set(1.0)           # bias/ones column
    # --- W1 block (with b1 folded in) ---
    slab = slab.at[W1_OFF:W1_OFF + N_FEATURES, 0:HIDDEN].set(w1.astype(jnp.float32))
    slab = slab.at[W1_OFF + N_FEATURES, 0:HIDDEN].set(b1.astype(jnp.float32))
    slab = slab.at[W1_OFF + N_FEATURES, HIDDEN].set(1.0)      # carries the ones col into h
    # --- W2 block (with b2 folded in) ---
    slab = slab.at[W2_OFF:W2_OFF + HIDDEN, 0:N_CLASSES].set(w2.astype(jnp.float32))
    slab = slab.at[W2_OFF + HIDDEN, 0:N_CLASSES].set(b2.astype(jnp.float32))
    return slab


def gcn_forward(slab):
    """Takes the init-time packed slab; returns (h [34,3], z [34,4])."""
    h, z = pl.pallas_call(
        _gcn_kernel,
        out_shape=(
            jax.ShapeDtypeStruct((N_NODES, HIDDEN), jnp.float32),
            jax.ShapeDtypeStruct((N_NODES, N_CLASSES), jnp.float32),
        ),
        in_specs=[pl.BlockSpec(memory_space=pltpu.MemorySpace.VMEM)],
        out_specs=(
            pl.BlockSpec(memory_space=pltpu.MemorySpace.VMEM),
            pl.BlockSpec(memory_space=pltpu.MemorySpace.VMEM),
        ),
    )(slab)
    return h, z


def build_normalized_adjacency(edge_index, num_nodes):
    """Dense Â = D^{-1/2} (A + I) D^{-1/2}, matching GCNConv's default norm."""
    src, dst = edge_index[0], edge_index[1]
    a = jnp.zeros((num_nodes, num_nodes), jnp.float32)
    a = a.at[src, dst].set(1.0)
    a = jnp.maximum(a, a.T)  # undirected graph
    idx = jnp.arange(num_nodes)
    a = a.at[idx, idx].set(1.0)  # add self-loops
    deg = a.sum(axis=1)
    d_inv_sqrt = jax.lax.rsqrt(deg)
    return d_inv_sqrt[:, None] * a * d_inv_sqrt[None, :]


if __name__ == "__main__":
    key = jax.random.PRNGKey(0)
    k_edges, k_w1, k_w2, k_b2 = jax.random.split(key, 4)

    # Node features: identity-like one-hot features (as in KarateClub).
    x = jnp.eye(N_NODES, N_FEATURES, dtype=jnp.float32)

    # Deterministic synthetic edge_index [2, E] over 34 nodes.
    edge_index = jax.random.randint(
        k_edges, (2, N_EDGES), 0, N_NODES, dtype=jnp.int32
    )
    a_hat = build_normalized_adjacency(edge_index, N_NODES)

    # GCNConv weight: glorot-style init, bias zeros.
    limit1 = jnp.sqrt(6.0 / (N_FEATURES + HIDDEN))
    w1 = jax.random.uniform(
        k_w1, (N_FEATURES, HIDDEN), jnp.float32, -limit1, limit1
    )
    b1 = jnp.zeros((HIDDEN,), jnp.float32)

    # Linear(3, 4): uniform(-1/sqrt(fan_in), 1/sqrt(fan_in)) like torch.nn.Linear.
    limit2 = 1.0 / jnp.sqrt(float(HIDDEN))
    w2 = jax.random.uniform(k_w2, (HIDDEN, N_CLASSES), jnp.float32, -limit2, limit2)
    b2 = jax.random.uniform(k_b2, (N_CLASSES,), jnp.float32, -limit2, limit2)

    # Pack ONCE at init; the jitted hot path is a single-input, single-call kernel.
    slab = jax.block_until_ready(pad_params(a_hat, x, w1, b1, w2, b2))

    fwd = jax.jit(gcn_forward)
    h, z = fwd(slab)
    jax.block_until_ready((h, z))

    # Plain-JAX reference check of the forward semantics (unpadded math).
    h_ref = jnp.maximum(a_hat @ (x @ w1) + b1, 0.0)
    z_ref = h_ref @ w2 + b2
    assert h.shape == (N_NODES, HIDDEN) and z.shape == (N_NODES, N_CLASSES)
    assert jnp.allclose(h, h_ref, atol=1e-5, rtol=1e-5)
    assert jnp.allclose(z, z_ref, atol=1e-5, rtol=1e-5)

    print("KERNEL_OK")
</pallas_src>

<mosaic_0001>
module attributes {stable_mosaic.version = 11 : i64} {
  func.func @_gcn_kernel(%arg0: memref<296x128xf32, #tpu.memory_space<vmem>>, %arg1: memref<34x3xf32, #tpu.memory_space<vmem>>, %arg2: memref<34x4xf32, #tpu.memory_space<vmem>>) attributes {dimension_semantics = [], scalar_prefetch = 0 : i64, scratch_operands = 0 : i64, tpu.core_type = #tpu.core_type<tc>} {
    %c0 = arith.constant 0 : index
    %c0_0 = arith.constant 0 : index
    %0 = vector.load %arg0[%c0, %c0_0] : memref<296x128xf32, #tpu.memory_space<vmem>>, vector<40x128xf32>
    %c40 = arith.constant 40 : index
    %c0_1 = arith.constant 0 : index
    %1 = vector.load %arg0[%c40, %c0_1] : memref<296x128xf32, #tpu.memory_space<vmem>>, vector<128x128xf32>
    %c168 = arith.constant 168 : index
    %c0_2 = arith.constant 0 : index
    %2 = vector.load %arg0[%c168, %c0_2] : memref<296x128xf32, #tpu.memory_space<vmem>>, vector<128x128xf32>
    %cst = arith.constant dense<0.000000e+00> : vector<40x128xf32>
    %3 = tpu.matmul %0, %1, %cst {dimension_numbers = #tpu.dot_dimension_numbers<[1], [0], [0], [1], [0, 0, 1, 1], [], []>} : vector<40x128xf32>, vector<128x128xf32>, vector<40x128xf32> -> vector<40x128xf32>
    %cst_3 = arith.constant 0.000000e+00 : f32
    %4 = vector.broadcast %cst_3 : f32 to vector<40x128xf32>
    %5 = arith.maximumf %3, %4 : vector<40x128xf32>
    %cst_4 = arith.constant dense<0.000000e+00> : vector<40x128xf32>
    %6 = tpu.matmul %5, %2, %cst_4 {dimension_numbers = #tpu.dot_dimension_numbers<[1], [0], [0], [1], [0, 0, 1, 1], [], []>} : vector<40x128xf32>, vector<128x128xf32>, vector<40x128xf32> -> vector<40x128xf32>
    %7 = vector.extract_strided_slice %5 {offsets = [0, 0], sizes = [34, 3], strides = [1, 1]} : vector<40x128xf32> to vector<34x3xf32>
    %c0_5 = arith.constant 0 : index
    %c0_6 = arith.constant 0 : index
    %8 = vector.load %arg1[%c0_5, %c0_6] : memref<34x3xf32, #tpu.memory_space<vmem>>, vector<34x3xf32>
    tpu.vector_store %arg1[%c0_5, %c0_6], %7 {strides = array<i32>} : memref<34x3xf32, #tpu.memory_space<vmem>>, vector<34x3xf32>,
    %9 = vector.extract_strided_slice %6 {offsets = [0, 0], sizes = [34, 4], strides = [1, 1]} : vector<40x128xf32> to vector<34x4xf32>
    %c0_7 = arith.constant 0 : index
    %c0_8 = arith.constant 0 : index
    %10 = vector.load %arg2[%c0_7, %c0_8] : memref<34x4xf32, #tpu.memory_space<vmem>>, vector<34x4xf32>
    tpu.vector_store %arg2[%c0_7, %c0_8], %9 {strides = array<i32>} : memref<34x4xf32, #tpu.memory_space<vmem>>, vector<34x4xf32>,
    return
  }
}

</mosaic_0001>

<bundles_post_ra>
// kernel: gcn_forward.1
= control target key start
LH: loop header
LB: loop body
LE: loop exit
PB: predicated region body
PF: predicated region fallthrough
CT: control target
= control target key end

     0   :  { %8 = vsyncpa [#allocation3], 0  ;;  %s216_s12 = smov [#allocation2]   ;;  %s217_s14 = smov 128   ;;  %s267_s0 = inlined_call_operand.hbm [shape: f32[296,128], index: 0, kind: input, shape index: {}]   ;;  %s268_s1 = inlined_call_operand.vmem [shape: f32[34,3], index: 1, kind: output, shape index: {0}]   ;;  %s269_s2 = inlined_call_operand.vmem [shape: f32[34,4], index: 2, kind: output, shape index: {1}]  }
   0x1   :  { %s13_s11 = sshll.u32 %s267_s0, 4  ;;  %s15_s13 = sshll.u32 %s216_s12, 4  ;;  %s14_s11 = int_to_ptr.hbm [resolvable:$true] %s13_s11  ;;  %s16_s13 = int_to_ptr.vmem [resolvable:$true] %s15_s13 }
   0x2   :  { %s218_s15 = smov 8  }
   0x3   :  { %21 = dma.hbm_to_vmem [thread:$0]  %s14_s11, 4736, %s16_s13, [#allocation3], %s217_s14, %s217_s14, %s218_s15  }
   0x4   :  { %214 = dma.done.wait [#allocation3], 4736  }
   0x5   :  { %215 = vsyncadd [#allocation3], 4294962560  ;;  %v46_v0 = vld [vmem:[#allocation2 + $0xa0] sm:$0xff]  ;;  %v45_v1 = vld [vmem:[#allocation2 + $0x98] sm:$0xff]  ;;  %vm132_vm0 = vcmask 23552   ;;  %vm137_vm1 = vcmask 17408  }
   0x6   :  { %63 = vmatpush.msra.mxu0 %v46_v0  ;;  %155 = vmatpush.msra.mxu2 %v46_v0  ;;  %v44_v2 = vld [vmem:[#allocation2 + $0x90] sm:$0xff]  ;;  %v43_v3 = vld [vmem:[#allocation2 + $0x88] sm:$0xff]  ;;  %v42_v4 = vld [vmem:[#allocation2 + $0x80] sm:$0xff]  ;;  %vm139_vm2 = vcmask 31744   ;;  %vm144_vm3 = vcmask 25600  }
   0x7   :  { %v41_v5 = vld [vmem:[#allocation2 + $0x78] sm:$0xff]  ;;  %v40_v6 = vld [vmem:[#allocation2 + $0x70] sm:$0xff]  ;;  %v39_v7 = vld [vmem:[#allocation2 + $0x68] sm:$0xff] }
   0x8   :  { %64 = vmatpush.msra.mxu0 %v45_v1  ;;  %156 = vmatpush.msra.mxu2 %v45_v1  ;;  %v38_v8 = vld [vmem:[#allocation2 + $0x60] sm:$0xff]  ;;  %v37_v9 = vld [vmem:[#allocation2 + $0x58] sm:$0xff]  ;;  %v36_v12 = vld [vmem:[#allocation2 + $0x50] sm:$0xff] }
   0x9   :  { %v62_v10 = vld [vmem:[#allocation2 + $0x120] sm:$0xff]  ;;  %v61_v11 = vld [vmem:[#allocation2 + $0x118] sm:$0xff]  ;;  %v60_v13 = vld [vmem:[#allocation2 + $0x110] sm:$0xff] }
   0xa   :  { %65 = vmatpush.msra.mxu0 %v44_v2  ;;  %157 = vmatpush.msra.mxu2 %v44_v2  ;;  %v35_v14 = vld [vmem:[#allocation2 + $0x48] sm:$0xff]  ;;  %v34_v16 = vld [vmem:[#allocation2 + $0x40] sm:$0xff]  ;;  %v33_v18 = vld [vmem:[#allocation2 + $0x38] sm:$0xff] }
   0xb   :  { %100 = vmatpush.msra.mxu1 %v62_v10  ;;  %171 = vmatpush.msra.mxu3 %v62_v10  ;;  %v59_v15 = vld [vmem:[#allocation2 + $0x108] sm:$0xff]  ;;  %v58_v17 = vld [vmem:[#allocation2 + $0x100] sm:$0xff]  ;;  %v57_v19 = vld [vmem:[#allocation2 + $0xf8] sm:$0xff] }
   0xc   :  { %66 = vmatpush.msra.mxu0 %v43_v3  ;;  %158 = vmatpush.msra.mxu2 %v43_v3  ;;  %v32_v20 = vld [vmem:[#allocation2 + $0x30] sm:$0xff]  ;;  %v31_v22 = vld [vmem:[#allocation2 + $0x28] sm:$0xff]  ;;  %v26_v23 = vld [vmem:[#allocation2] sm:$0xff] }
   0xd   :  { %101 = vmatpush.msra.mxu1 %v61_v11  ;;  %172 = vmatpush.msra.mxu3 %v61_v11  ;;  %v56_v21 = vld [vmem:[#allocation2 + $0xf0] sm:$0xff]  ;;  %v55_v25 = vld [vmem:[#allocation2 + $0xe8] sm:$0xff]  ;;  %v54_v26 = vld [vmem:[#allocation2 + $0xe0] sm:$0xff] }
   0xe   :  { %67 = vmatpush.msra.mxu0 %v42_v4  ;;  %159 = vmatpush.msra.mxu2 %v42_v4  ;;  %v28_v24 = vld [vmem:[#allocation2 + $0x10] sm:$0xff]  ;;  %v53_v27 = vld [vmem:[#allocation2 + $0xd8] sm:$0xff]  ;;  %v27_v29 = vld [vmem:[#allocation2 + $0x8] sm:$0xff] }
   0xf   :  { %102 = vmatpush.msra.mxu1 %v60_v13  ;;  %173 = vmatpush.msra.mxu3 %v60_v13  ;;  %v52_v28 = vld [vmem:[#allocation2 + $0xd0] sm:$0xff]  ;;  %v29_v30 = vld [vmem:[#allocation2 + $0x18] sm:$0xff]  ;;  %v51_v31 = vld [vmem:[#allocation2 + $0xc8] sm:$0xff] }
  0x10   :  { %68 = vmatpush.msra.mxu0 %v41_v5  ;;  %160 = vmatpush.msra.mxu2 %v41_v5  ;;  %v50_v32 = vld [vmem:[#allocation2 + $0xc0] sm:$0xff]  ;;  %v49_v33 = vld [vmem:[#allocation2 + $0xb8] sm:$0xff]  ;;  %v48_v35 = vld [vmem:[#allocation2 + $0xb0] sm:$0xff] }
  0x11   :  { %103 = vmatpush.msra.mxu1 %v59_v15  ;;  %174 = vmatpush.msra.mxu3 %v59_v15  ;;  %v30_v34 = vld [vmem:[#allocation2 + $0x20] sm:$0xff]  ;;  %v47_v36 = vld [vmem:[#allocation2 + $0xa8] sm:$0xff] }
  0x12   :  { %69 = vmatpush.msra.mxu0 %v40_v6  ;;  %161 = vmatpush.msra.mxu2 %v40_v6 }
  0x13   :  { %104 = vmatpush.msra.mxu1 %v58_v17  ;;  %175 = vmatpush.msra.mxu3 %v58_v17 }
  0x14   :  { %70 = vmatpush.msra.mxu0 %v39_v7  ;;  %162 = vmatpush.msra.mxu2 %v39_v7 }
  0x15   :  { %105 = vmatpush.msra.mxu1 %v57_v19  ;;  %176 = vmatpush.msra.mxu3 %v57_v19 }
  0x16   :  { %71 = vmatpush.msra.mxu0 %v38_v8  ;;  %163 = vmatpush.msra.mxu2 %v38_v8 }
  0x17   :  { %106 = vmatpush.msra.mxu1 %v56_v21  ;;  %177 = vmatpush.msra.mxu3 %v56_v21 }
  0x18   :  { %72 = vmatpush.msra.mxu0 %v37_v9  ;;  %164 = vmatpush.msra.mxu2 %v37_v9 }
  0x19   :  { %107 = vmatpush.msra.mxu1 %v55_v25  ;;  %178 = vmatpush.msra.mxu3 %v55_v25 }
  0x1a   :  { %73 = vmatpush.msra.mxu0 %v36_v12  ;;  %165 = vmatpush.msra.mxu2 %v36_v12 }
  0x1b   :  { %108 = vmatpush.msra.mxu1 %v54_v26  ;;  %179 = vmatpush.msra.mxu3 %v54_v26 }
  0x1c   :  { %74 = vmatpush.msra.mxu0 %v35_v14  ;;  %166 = vmatpush.msra.mxu2 %v35_v14 }
  0x1d   :  { %109 = vmatpush.msra.mxu1 %v53_v27  ;;  %180 = vmatpush.msra.mxu3 %v53_v27 }
  0x1e   :  { %75 = vmatpush.msra.mxu0 %v34_v16  ;;  %167 = vmatpush.msra.mxu2 %v34_v16 }
  0x1f   :  { %110 = vmatpush.msra.mxu1 %v52_v28  ;;  %181 = vmatpush.msra.mxu3 %v52_v28 }
  0x20   :  { %76 = vmatpush.msra.mxu0 %v33_v18  ;;  %168 = vmatpush.msra.mxu2 %v33_v18 }
  0x21   :  { %111 = vmatpush.msra.mxu1 %v51_v31  ;;  %182 = vmatpush.msra.mxu3 %v51_v31 }
  0x22   :  { %77 = vmatpush.msra.mxu0 %v32_v20  ;;  %169 = vmatpush.msra.mxu2 %v32_v20 }
  0x23   :  { %112 = vmatpush.msra.mxu1 %v50_v32  ;;  %183 = vmatpush.msra.mxu3 %v50_v32 }
  0x24   :  { %78 = vmatpush.msra.mxu0 %v31_v22  ;;  %170 = vmatpush.msra.mxu2 %v31_v22 }
  0x25   :  { %79 = vmatmul.f32.vlgmr.msra.gmra.mxu0 %v26_v23  ;;  %85 = vmatmul.f32.vlgmr.msra.gmra.mxu2 %v28_v24 }
  0x26   :  { %113 = vmatpush.msra.mxu1 %v49_v33  ;;  %184 = vmatpush.msra.mxu3 %v49_v33 }
  0x28   :  { %114 = vmatpush.msra.mxu1 %v48_v35  ;;  %185 = vmatpush.msra.mxu3 %v48_v35 }
  0x2a   :  { %115 = vmatpush.msra.mxu1 %v47_v36  ;;  %186 = vmatpush.msra.mxu3 %v47_v36 }
  0x2d   :  { %82 = vmatmul.f32.gmra.mxu0 %v27_v29  ;;  %88 = vmatmul.f32.gmra.mxu2 %v29_v30 }
  0x35   :  { %91 = vmatmul.f32.gmra.mxu2 %v30_v34 }
  0xa2   :  { %v80_v37 = vpop.f32.mrf.mxu0 }
  0xa3   :  { %v95_v38 = vmax.f32 %v80_v37, 0.0 }
  0xa5   :  { %133 = vst.msk [vmem:[%s268_s1] sm:$0xff] %vm132_vm0, %v95_v38  ;;  %116 = vmatmul.f32.vlgmr.msra.gmra.mxu1 %v95_v38 }
  0xa8   :  { %v86_v39 = vpop.f32.mrf.mxu2 }
  0xa9   :  { %v97_v40 = vmax.f32 %v86_v39, 0.0 }
  0xaa   :  { %v83_v41 = vpop.f32.mrf.mxu0 }
  0xab   :  { %135 = vst.msk [vmem:[%s268_s1 + $0x10] sm:$0xff] %vm132_vm0, %v97_v40  ;;  %v96_v42 = vmax.f32 %v83_v41, 0.0 }
  0xad   :  { %134 = vst.msk [vmem:[%s268_s1 + $0x8] sm:$0xff] %vm132_vm0, %v96_v42  ;;  %119 = vmatmul.f32.gmra.mxu1 %v96_v42 }
  0xb0   :  { %v89_v43 = vpop.f32.mrf.mxu2 }
  0xb1   :  { %v98_v44 = vmax.f32 %v89_v43, 0.0 }
  0xb3   :  { %136 = vst.msk [vmem:[%s268_s1 + $0x18] sm:$0xff] %vm132_vm0, %v98_v44  ;;  %125 = vmatmul.f32.vlgmr.msra.gmra.mxu3 %v98_v44 }
  0xb5   :  { %122 = vmatmul.f32.gmra.mxu1 %v97_v40 }
  0xb8   :  { %v92_v45 = vpop.f32.mrf.mxu2 }
  0xb9   :  { %v99_v46 = vmax.f32 %v92_v45, 0.0 }
  0xbb   :  { %138 = vst.msk [vmem:[%s268_s1 + $0x20] sm:$0x3] %vm137_vm1, %v99_v46  ;;  %128 = vmatmul.f32.gmra.mxu3 %v99_v46 }
 0x122   :  { %v117_v47 = vpop.f32.mrf.mxu1 }
 0x123   :  { %140 = vst.msk [vmem:[%s269_s2] sm:$0xff] %vm139_vm2, %v117_v47 }
 0x12a   :  { %v120_v48 = vpop.f32.mrf.mxu1 }
 0x12b   :  { %141 = vst.msk [vmem:[%s269_s2 + $0x8] sm:$0xff] %vm139_vm2, %v120_v48 }
 0x132   :  { %v123_v49 = vpop.f32.mrf.mxu1 }
 0x133   :  { %142 = vst.msk [vmem:[%s269_s2 + $0x10] sm:$0xff] %vm139_vm2, %v123_v49 }
 0x136   :  { %v126_v50 = vpop.f32.mrf.mxu3 }
 0x137   :  { %143 = vst.msk [vmem:[%s269_s2 + $0x18] sm:$0xff] %vm139_vm2, %v126_v50 }
 0x13e   :  { %v129_v51 = vpop.f32.mrf.mxu3 }
 0x13f   :  { %145 = vst.msk [vmem:[%s269_s2 + $0x20] sm:$0x3] %vm144_vm3, %v129_v51 }
 0x140   :  { %154 = vsyncpa [#allocation3], 1 }

</bundles_post_ra>
